<compile_context>
chip_gen: v7x
topology: tpu7x:2x2x1
jax: 0.10.0
libtpu: 0.0.40
codegen_flags: <defaults>
</compile_context>

<pallas_src>
import functools

import jax
import jax.numpy as jnp
import numpy as np
from jax.experimental import pallas as pl
from jax.experimental.pallas import tpu as pltpu


NEG_SLOPE = 0.2      # PyG GATConv default LeakyReLU negative slope
MASK_VAL = -1e30     # additive-mask value for non-edges


# ----------------------------------------------------------------------------
# One GATConv layer on a dense adjacency, writing a lane-dense [N, H*C] ref.
# ----------------------------------------------------------------------------
def _gat_block(x, adj_mask, w_all, adst_blk, asrc_blk, bias_row, out_ref,
               *, heads, C, apply_relu):
    """x:[N,Fin]  adj_mask:[N,N] bool (adj[i,j] <=> edge j->i, self-loops in)
    w_all:[Fin,H*C]  adst_blk/asrc_blk:[H*C,H]  bias_row:[1,H*C]
    Writes out_ref[:, h*C:(h+1)*C] = head-h output (PyG concat=True layout)."""
    # All heads' feature transform in one MXU call.
    xh_all = jnp.dot(x, w_all, preferred_element_type=jnp.float32)          # [N, H*C]
    # All heads' attention projections as two MXU calls (block matrices pick
    # out the per-head feature slice), instead of per-head mul + lane-reduce.
    a_dst = jnp.dot(xh_all, adst_blk, preferred_element_type=jnp.float32)   # [N, H]
    a_src = jnp.dot(xh_all, asrc_blk, preferred_element_type=jnp.float32)   # [N, H]
    a_src_t = jnp.transpose(a_src)                                          # [H, N] (hoisted)

    for h in range(heads):  # static unroll (heads is tiny)
        # logits: e[i, j] = leaky_relu(a_dst[i] + a_src[j]); softmax over j.
        e = a_dst[:, h:h + 1] + a_src_t[h:h + 1, :]                         # [N, N]
        e = jnp.where(e > 0, e, jnp.float32(NEG_SLOPE) * e)
        e = jnp.where(adj_mask, e, jnp.float32(MASK_VAL))
        e = e - jnp.max(e, axis=-1, keepdims=True)
        p = jnp.exp(e)
        alpha = p * pl.reciprocal(jnp.sum(p, axis=-1, keepdims=True),
                                  approx=True)
        oh = jnp.dot(alpha, xh_all[:, h * C:(h + 1) * C],
                     preferred_element_type=jnp.float32)                    # [N, C]
        oh = oh + bias_row[:, h * C:(h + 1) * C]
        if apply_relu:
            oh = jnp.maximum(oh, 0.0)
        out_ref[:, h * C:(h + 1) * C] = oh


# ----------------------------------------------------------------------------
# Fused forward kernel: gat1 + relu + gat2 + question linear
# ----------------------------------------------------------------------------
def _make_fused_kernel(heads, C):
    def kernel(x_ref, adj_ref,
               w1_ref, adst1_ref, asrc1_ref, b1_ref,
               w2_ref, adst2_ref, asrc2_ref, b2_ref,
               q_ref, wq_ref, bq_ref,
               ques_ref, h_ref,
               h1_scratch):
        # TODO(synk): for large N, carry adj as int8/bool and row-tile the grid.
        adj_mask = adj_ref[...] > 0                                          # [N, N]

        # gat1 + ReLU (tag dropout p=0.0 -> identity). Intermediate stays in VMEM.
        _gat_block(x_ref[...], adj_mask, w1_ref[...], adst1_ref[...],
                   asrc1_ref[...], b1_ref[...], h1_scratch,
                   heads=heads, C=C, apply_relu=True)

        # gat2 -> final node embedding, written lane-dense.
        _gat_block(h1_scratch[...], adj_mask, w2_ref[...], adst2_ref[...],
                   asrc2_ref[...], b2_ref[...], h_ref,
                   heads=heads, C=C, apply_relu=False)

        # question encoder (que dropout p=0.0 -> identity): q_emb @ Wq + bq
        ques_ref[...] = (jnp.dot(q_ref[...], wq_ref[...],
                                 preferred_element_type=jnp.float32)
                         + bq_ref[...])
    return kernel


def gat_model_forward(params, x, adj, *, heads):
    """Fused GATModel forward. Returns (ques [Q, H*C], h [N, H*C])."""
    N, _ = x.shape
    C = params["w1"].shape[-1]
    HC = heads * C
    Q = params["q_emb"].shape[0]

    # --- tiny trace-time param re-layouts (outside the kernel) ---------------
    def w_concat(w):        # [H, Fin, C] -> [Fin, H*C], column block h = W_h
        return jnp.transpose(w, (1, 0, 2)).reshape(w.shape[1], HC)

    def att_block(att):     # [H, 1, C] -> [H*C, H]; column h holds att_h in rows h*C:(h+1)*C
        eye = jnp.eye(heads, dtype=att.dtype)                 # [H, H]
        blk = att[:, 0, :, None] * eye[:, None, :]            # [H, C, H]
        return blk.reshape(HC, heads)

    def bias_row(b):        # [H, 1, C] -> [1, H*C]
        return b[:, 0, :].reshape(1, HC)

    inputs = (
        x, adj,
        w_concat(params["w1"]), att_block(params["adst1"]),
        att_block(params["asrc1"]), bias_row(params["b1"]),
        w_concat(params["w2"]), att_block(params["adst2"]),
        att_block(params["asrc2"]), bias_row(params["b2"]),
        params["q_emb"], params["wq"], params["bq"],
    )

    def spec2d(shape):
        return pl.BlockSpec(shape, lambda i: (0, 0))

    ques, h = pl.pallas_call(
        _make_fused_kernel(heads, C),
        out_shape=(jax.ShapeDtypeStruct((Q, HC), jnp.float32),
                   jax.ShapeDtypeStruct((N, HC), jnp.float32)),
        grid=(1,),
        in_specs=[spec2d(a.shape) for a in inputs],
        out_specs=(spec2d((Q, HC)), spec2d((N, HC))),
        scratch_shapes=[pltpu.VMEM((N, HC), jnp.float32)],   # layer-1 activations
        compiler_params=pltpu.CompilerParams(
            dimension_semantics=("arbitrary",)),
    )(*inputs)
    return ques, h


# ----------------------------------------------------------------------------
# Pure-JAX reference for verification
# ----------------------------------------------------------------------------
def _gat_ref(x, w, att_src, att_dst, bias, adj, apply_relu):
    H = w.shape[0]
    outs = []
    hi = jax.lax.Precision.HIGHEST
    for h in range(H):
        xh = jnp.dot(x, w[h], precision=hi)
        a_src = jnp.sum(xh * att_src[h], axis=-1, keepdims=True)
        a_dst = jnp.sum(xh * att_dst[h], axis=-1, keepdims=True)
        e = a_dst + a_src.T
        e = jnp.where(e > 0, e, 0.2 * e)
        e = jnp.where(adj > 0, e, -1e30)
        e = e - jnp.max(e, axis=-1, keepdims=True)
        p = jnp.exp(e)
        alpha = p / jnp.sum(p, axis=-1, keepdims=True)
        oh = jnp.dot(alpha, xh, precision=hi) + bias[h]
        if apply_relu:
            oh = jnp.maximum(oh, 0.0)
        outs.append(oh)
    out = jnp.stack(outs, axis=0)                  # [H, N, C]
    return jnp.transpose(out, (1, 0, 2)).reshape(x.shape[0], -1)


def _model_ref(params, x, adj):
    h = _gat_ref(x, params["w1"], params["asrc1"], params["adst1"],
                 params["b1"], adj, True)
    h = _gat_ref(h, params["w2"], params["asrc2"], params["adst2"],
                 params["b2"], adj, False)
    ques = jnp.dot(params["q_emb"], params["wq"],
                   precision=jax.lax.Precision.HIGHEST) + params["bq"]
    return ques, h


# ----------------------------------------------------------------------------
# Main
# ----------------------------------------------------------------------------
if __name__ == "__main__":
    # Small, deterministic shapes consistent with the module's forward:
    N = 16          # tag-graph nodes
    E = 40          # edges
    Q = 8           # number of questions (rows of q_emb)
    in_size = 16
    hid_size = 32
    heads = 2

    key = jax.random.PRNGKey(0)
    keys = jax.random.split(key, 12)

    def init(k, shape, scale=0.1):
        return (scale * jax.random.normal(k, shape)).astype(jnp.float32)

    params = {
        # gat1: GATConv(in_size, hid_size, heads)
        "w1": init(keys[0], (heads, in_size, hid_size)),
        "asrc1": init(keys[1], (heads, 1, hid_size)),
        "adst1": init(keys[2], (heads, 1, hid_size)),
        "b1": init(keys[3], (heads, 1, hid_size)),
        # gat2: GATConv(hid_size*heads, hid_size, heads)
        "w2": init(keys[4], (heads, hid_size * heads, hid_size)),
        "asrc2": init(keys[5], (heads, 1, hid_size)),
        "adst2": init(keys[6], (heads, 1, hid_size)),
        "b2": init(keys[7], (heads, 1, hid_size)),
        # q_encoder: Linear(in_size, hid_size*heads)   (W stored as [in, out])
        "wq": init(keys[8], (in_size, hid_size * heads)),
        "bq": init(keys[9], (1, hid_size * heads)),
        # frozen question embedding q_e: [Q, in_size]
        "q_emb": init(keys[10], (Q, in_size), scale=1.0),
    }

    # tag_graph.x and tag_graph.edge_index (duplicate edges collapse in the
    # dense-adjacency formulation).
    x = init(keys[11], (N, in_size), scale=1.0)
    ek0, ek1 = jax.random.split(jax.random.PRNGKey(1))
    src = jax.random.randint(ek0, (E,), 0, N)
    dst = jax.random.randint(ek1, (E,), 0, N)
    adj = jnp.zeros((N, N), jnp.float32).at[dst, src].set(1.0)
    adj = jnp.maximum(adj, jnp.eye(N, dtype=jnp.float32))   # add self-loops

    fwd = jax.jit(functools.partial(gat_model_forward, heads=heads))
    ques, h = fwd(params, x, adj)
    jax.block_until_ready((ques, h))

    ques_ref, h_ref = _model_ref(params, x, adj)
    np.testing.assert_allclose(np.asarray(ques), np.asarray(ques_ref),
                               rtol=2e-2, atol=2e-2)
    np.testing.assert_allclose(np.asarray(h), np.asarray(h_ref),
                               rtol=2e-2, atol=2e-2)

    assert ques.shape == (Q, hid_size * heads)
    assert h.shape == (N, hid_size * heads)
    print("KERNEL_OK")
</pallas_src>

<mosaic_0001>
module attributes {stable_mosaic.version = 11 : i64} {
  func.func @kernel(%arg0: i32, %arg1: memref<16x16xf32, #tpu.memory_space<vmem>>, %arg2: memref<16x16xf32, #tpu.memory_space<vmem>>, %arg3: memref<16x64xf32, #tpu.memory_space<vmem>>, %arg4: memref<64x2xf32, #tpu.memory_space<vmem>>, %arg5: memref<64x2xf32, #tpu.memory_space<vmem>>, %arg6: memref<1x64xf32, #tpu.memory_space<vmem>>, %arg7: memref<64x64xf32, #tpu.memory_space<vmem>>, %arg8: memref<64x2xf32, #tpu.memory_space<vmem>>, %arg9: memref<64x2xf32, #tpu.memory_space<vmem>>, %arg10: memref<1x64xf32, #tpu.memory_space<vmem>>, %arg11: memref<8x16xf32, #tpu.memory_space<vmem>>, %arg12: memref<16x64xf32, #tpu.memory_space<vmem>>, %arg13: memref<1x64xf32, #tpu.memory_space<vmem>>, %arg14: memref<8x64xf32, #tpu.memory_space<vmem>>, %arg15: memref<16x64xf32, #tpu.memory_space<vmem>>, %arg16: memref<16x64xf32, #tpu.memory_space<vmem>>) attributes {dimension_semantics = [#tpu.dimension_semantics<arbitrary>], iteration_bounds = array<i64: 1>, scalar_prefetch = 0 : i64, scratch_operands = 1 : i64, tpu.core_type = #tpu.core_type<tc>, window_params = [{pipeline_mode = #tpu.pipeline_mode<synchronous>, transform_indices = @transform_0, window_bounds = array<i64: 16, 16>}, {pipeline_mode = #tpu.pipeline_mode<synchronous>, transform_indices = @transform_1, window_bounds = array<i64: 16, 16>}, {pipeline_mode = #tpu.pipeline_mode<synchronous>, transform_indices = @transform_2, window_bounds = array<i64: 16, 64>}, {pipeline_mode = #tpu.pipeline_mode<synchronous>, transform_indices = @transform_3, window_bounds = array<i64: 64, 2>}, {pipeline_mode = #tpu.pipeline_mode<synchronous>, transform_indices = @transform_4, window_bounds = array<i64: 64, 2>}, {pipeline_mode = #tpu.pipeline_mode<synchronous>, transform_indices = @transform_5, window_bounds = array<i64: 1, 64>}, {pipeline_mode = #tpu.pipeline_mode<synchronous>, transform_indices = @transform_6, window_bounds = array<i64: 64, 64>}, {pipeline_mode = #tpu.pipeline_mode<synchronous>, transform_indices = @transform_7, window_bounds = array<i64: 64, 2>}, {pipeline_mode = #tpu.pipeline_mode<synchronous>, transform_indices = @transform_8, window_bounds = array<i64: 64, 2>}, {pipeline_mode = #tpu.pipeline_mode<synchronous>, transform_indices = @transform_9, window_bounds = array<i64: 1, 64>}, {pipeline_mode = #tpu.pipeline_mode<synchronous>, transform_indices = @transform_10, window_bounds = array<i64: 8, 16>}, {pipeline_mode = #tpu.pipeline_mode<synchronous>, transform_indices = @transform_11, window_bounds = array<i64: 16, 64>}, {pipeline_mode = #tpu.pipeline_mode<synchronous>, transform_indices = @transform_12, window_bounds = array<i64: 1, 64>}, {pipeline_mode = #tpu.pipeline_mode<synchronous>, transform_indices = @transform_13, window_bounds = array<i64: 8, 64>}, {pipeline_mode = #tpu.pipeline_mode<synchronous>, transform_indices = @transform_14, window_bounds = array<i64: 16, 64>}]} {
    %c0 = arith.constant 0 : index
    %c0_0 = arith.constant 0 : index
    %0 = vector.load %arg2[%c0, %c0_0] : memref<16x16xf32, #tpu.memory_space<vmem>>, vector<16x16xf32>
    %cst = arith.constant 0.000000e+00 : f32
    %1 = vector.broadcast %cst : f32 to vector<16x16xf32>
    %2 = arith.cmpf ogt, %0, %1 : vector<16x16xf32>
    %c0_1 = arith.constant 0 : index
    %c0_2 = arith.constant 0 : index
    %3 = vector.load %arg1[%c0_1, %c0_2] : memref<16x16xf32, #tpu.memory_space<vmem>>, vector<16x16xf32>
    %c0_3 = arith.constant 0 : index
    %c0_4 = arith.constant 0 : index
    %4 = vector.load %arg3[%c0_3, %c0_4] : memref<16x64xf32, #tpu.memory_space<vmem>>, vector<16x64xf32>
    %c0_5 = arith.constant 0 : index
    %c0_6 = arith.constant 0 : index
    %5 = vector.load %arg4[%c0_5, %c0_6] : memref<64x2xf32, #tpu.memory_space<vmem>>, vector<64x2xf32>
    %c0_7 = arith.constant 0 : index
    %c0_8 = arith.constant 0 : index
    %6 = vector.load %arg5[%c0_7, %c0_8] : memref<64x2xf32, #tpu.memory_space<vmem>>, vector<64x2xf32>
    %c0_9 = arith.constant 0 : index
    %c0_10 = arith.constant 0 : index
    %7 = vector.load %arg6[%c0_9, %c0_10] : memref<1x64xf32, #tpu.memory_space<vmem>>, vector<1x64xf32>
    %cst_11 = arith.constant dense<0.000000e+00> : vector<16x64xf32>
    %8 = tpu.matmul %3, %4, %cst_11 {dimension_numbers = #tpu.dot_dimension_numbers<[1], [0], [0], [1], [0, 0, 1, 1], [], []>} : vector<16x16xf32>, vector<16x64xf32>, vector<16x64xf32> -> vector<16x64xf32>
    %cst_12 = arith.constant dense<0.000000e+00> : vector<16x2xf32>
    %9 = tpu.matmul %8, %5, %cst_12 {dimension_numbers = #tpu.dot_dimension_numbers<[1], [0], [0], [1], [0, 0, 1, 1], [], []>} : vector<16x64xf32>, vector<64x2xf32>, vector<16x2xf32> -> vector<16x2xf32>
    %cst_13 = arith.constant dense<0.000000e+00> : vector<16x2xf32>
    %10 = tpu.matmul %8, %6, %cst_13 {dimension_numbers = #tpu.dot_dimension_numbers<[1], [0], [0], [1], [0, 0, 1, 1], [], []>} : vector<16x64xf32>, vector<64x2xf32>, vector<16x2xf32> -> vector<16x2xf32>
    %11 = tpu.transpose %10, [1, 0] : vector<16x2xf32> -> vector<2x16xf32>
    %12 = vector.extract_strided_slice %9 {offsets = [0, 0], sizes = [16, 1], strides = [1, 1]} : vector<16x2xf32> to vector<16x1xf32>
    %13 = vector.extract_strided_slice %11 {offsets = [0, 0], sizes = [1, 16], strides = [1, 1]} : vector<2x16xf32> to vector<1x16xf32>
    %14 = vector.broadcast %12 : vector<16x1xf32> to vector<16x16xf32>
    %15 = vector.broadcast %13 : vector<1x16xf32> to vector<16x16xf32>
    %16 = arith.addf %14, %15 : vector<16x16xf32>
    %cst_14 = arith.constant 0.000000e+00 : f32
    %17 = vector.broadcast %cst_14 : f32 to vector<16x16xf32>
    %18 = arith.cmpf ogt, %16, %17 : vector<16x16xf32>
    %cst_15 = arith.constant 2.000000e-01 : f32
    %19 = vector.broadcast %cst_15 : f32 to vector<16x16xf32>
    %20 = arith.mulf %19, %16 : vector<16x16xf32>
    %21 = arith.select %18, %16, %20 : vector<16x16xi1>, vector<16x16xf32>
    %cst_16 = arith.constant -1.000000e+30 : f32
    %22 = vector.broadcast %cst_16 : f32 to vector<16x16xf32>
    %23 = arith.select %2, %21, %22 : vector<16x16xi1>, vector<16x16xf32>
    %cst_17 = arith.constant dense<0xFF800000> : vector<16xf32>
    %24 = vector.multi_reduction <maximumf>, %23, %cst_17 [1] : vector<16x16xf32> to vector<16xf32>
    %25 = vector.shape_cast %24 : vector<16xf32> to vector<16x1xf32>
    %26 = vector.broadcast %25 : vector<16x1xf32> to vector<16x16xf32>
    %27 = arith.subf %23, %26 : vector<16x16xf32>
    %28 = math.exp %27 : vector<16x16xf32>
    %cst_18 = arith.constant dense<0.000000e+00> : vector<16xf32>
    %29 = vector.multi_reduction <add>, %28, %cst_18 [1] : vector<16x16xf32> to vector<16xf32>
    %30 = vector.shape_cast %29 : vector<16xf32> to vector<16x1xf32>
    %31 = tpu.reciprocal %30 {approx = true} : vector<16x1xf32> -> vector<16x1xf32>
    %32 = vector.broadcast %31 : vector<16x1xf32> to vector<16x16xf32>
    %33 = arith.mulf %28, %32 : vector<16x16xf32>
    %34 = vector.extract_strided_slice %8 {offsets = [0, 0], sizes = [16, 32], strides = [1, 1]} : vector<16x64xf32> to vector<16x32xf32>
    %cst_19 = arith.constant dense<0.000000e+00> : vector<16x32xf32>
    %35 = tpu.matmul %33, %34, %cst_19 {dimension_numbers = #tpu.dot_dimension_numbers<[1], [0], [0], [1], [0, 0, 1, 1], [], []>} : vector<16x16xf32>, vector<16x32xf32>, vector<16x32xf32> -> vector<16x32xf32>
    %36 = vector.extract_strided_slice %7 {offsets = [0, 0], sizes = [1, 32], strides = [1, 1]} : vector<1x64xf32> to vector<1x32xf32>
    %37 = vector.broadcast %36 : vector<1x32xf32> to vector<16x32xf32>
    %38 = arith.addf %35, %37 : vector<16x32xf32>
    %cst_20 = arith.constant 0.000000e+00 : f32
    %39 = vector.broadcast %cst_20 : f32 to vector<16x32xf32>
    %40 = arith.maximumf %38, %39 : vector<16x32xf32>
    %c0_21 = arith.constant 0 : index
    %c0_22 = arith.constant 0 : index
    %41 = vector.load %arg16[%c0_21, %c0_22] : memref<16x64xf32, #tpu.memory_space<vmem>>, vector<16x32xf32>
    tpu.vector_store %arg16[%c0_21, %c0_22], %40 {strides = array<i32>} : memref<16x64xf32, #tpu.memory_space<vmem>>, vector<16x32xf32>,
    %42 = vector.extract_strided_slice %9 {offsets = [0, 1], sizes = [16, 1], strides = [1, 1]} : vector<16x2xf32> to vector<16x1xf32>
    %43 = vector.extract_strided_slice %11 {offsets = [1, 0], sizes = [1, 16], strides = [1, 1]} : vector<2x16xf32> to vector<1x16xf32>
    %44 = vector.broadcast %42 : vector<16x1xf32> to vector<16x16xf32>
    %45 = vector.broadcast %43 : vector<1x16xf32> to vector<16x16xf32>
    %46 = arith.addf %44, %45 : vector<16x16xf32>
    %cst_23 = arith.constant 0.000000e+00 : f32
    %47 = vector.broadcast %cst_23 : f32 to vector<16x16xf32>
    %48 = arith.cmpf ogt, %46, %47 : vector<16x16xf32>
    %cst_24 = arith.constant 2.000000e-01 : f32
    %49 = vector.broadcast %cst_24 : f32 to vector<16x16xf32>
    %50 = arith.mulf %49, %46 : vector<16x16xf32>
    %51 = arith.select %48, %46, %50 : vector<16x16xi1>, vector<16x16xf32>
    %cst_25 = arith.constant -1.000000e+30 : f32
    %52 = vector.broadcast %cst_25 : f32 to vector<16x16xf32>
    %53 = arith.select %2, %51, %52 : vector<16x16xi1>, vector<16x16xf32>
    %cst_26 = arith.constant dense<0xFF800000> : vector<16xf32>
    %54 = vector.multi_reduction <maximumf>, %53, %cst_26 [1] : vector<16x16xf32> to vector<16xf32>
    %55 = vector.shape_cast %54 : vector<16xf32> to vector<16x1xf32>
    %56 = vector.broadcast %55 : vector<16x1xf32> to vector<16x16xf32>
    %57 = arith.subf %53, %56 : vector<16x16xf32>
    %58 = math.exp %57 : vector<16x16xf32>
    %cst_27 = arith.constant dense<0.000000e+00> : vector<16xf32>
    %59 = vector.multi_reduction <add>, %58, %cst_27 [1] : vector<16x16xf32> to vector<16xf32>
    %60 = vector.shape_cast %59 : vector<16xf32> to vector<16x1xf32>
    %61 = tpu.reciprocal %60 {approx = true} : vector<16x1xf32> -> vector<16x1xf32>
    %62 = vector.broadcast %61 : vector<16x1xf32> to vector<16x16xf32>
    %63 = arith.mulf %58, %62 : vector<16x16xf32>
    %64 = vector.extract_strided_slice %8 {offsets = [0, 32], sizes = [16, 32], strides = [1, 1]} : vector<16x64xf32> to vector<16x32xf32>
    %cst_28 = arith.constant dense<0.000000e+00> : vector<16x32xf32>
    %65 = tpu.matmul %63, %64, %cst_28 {dimension_numbers = #tpu.dot_dimension_numbers<[1], [0], [0], [1], [0, 0, 1, 1], [], []>} : vector<16x16xf32>, vector<16x32xf32>, vector<16x32xf32> -> vector<16x32xf32>
    %66 = vector.extract_strided_slice %7 {offsets = [0, 32], sizes = [1, 32], strides = [1, 1]} : vector<1x64xf32> to vector<1x32xf32>
    %67 = vector.broadcast %66 : vector<1x32xf32> to vector<16x32xf32>
    %68 = arith.addf %65, %67 : vector<16x32xf32>
    %cst_29 = arith.constant 0.000000e+00 : f32
    %69 = vector.broadcast %cst_29 : f32 to vector<16x32xf32>
    %70 = arith.maximumf %68, %69 : vector<16x32xf32>
    %c0_30 = arith.constant 0 : index
    %c32 = arith.constant 32 : index
    %71 = vector.load %arg16[%c0_30, %c32] : memref<16x64xf32, #tpu.memory_space<vmem>>, vector<16x32xf32>
    tpu.vector_store %arg16[%c0_30, %c32], %70 {strides = array<i32>} : memref<16x64xf32, #tpu.memory_space<vmem>>, vector<16x32xf32>,
    %c0_31 = arith.constant 0 : index
    %c0_32 = arith.constant 0 : index
    %72 = vector.load %arg16[%c0_31, %c0_32] : memref<16x64xf32, #tpu.memory_space<vmem>>, vector<16x64xf32>
    %c0_33 = arith.constant 0 : index
    %c0_34 = arith.constant 0 : index
    %73 = vector.load %arg7[%c0_33, %c0_34] : memref<64x64xf32, #tpu.memory_space<vmem>>, vector<64x64xf32>
    %c0_35 = arith.constant 0 : index
    %c0_36 = arith.constant 0 : index
    %74 = vector.load %arg8[%c0_35, %c0_36] : memref<64x2xf32, #tpu.memory_space<vmem>>, vector<64x2xf32>
    %c0_37 = arith.constant 0 : index
    %c0_38 = arith.constant 0 : index
    %75 = vector.load %arg9[%c0_37, %c0_38] : memref<64x2xf32, #tpu.memory_space<vmem>>, vector<64x2xf32>
    %c0_39 = arith.constant 0 : index
    %c0_40 = arith.constant 0 : index
    %76 = vector.load %arg10[%c0_39, %c0_40] : memref<1x64xf32, #tpu.memory_space<vmem>>, vector<1x64xf32>
    %cst_41 = arith.constant dense<0.000000e+00> : vector<16x64xf32>
    %77 = tpu.matmul %72, %73, %cst_41 {dimension_numbers = #tpu.dot_dimension_numbers<[1], [0], [0], [1], [0, 0, 1, 1], [], []>} : vector<16x64xf32>, vector<64x64xf32>, vector<16x64xf32> -> vector<16x64xf32>
    %cst_42 = arith.constant dense<0.000000e+00> : vector<16x2xf32>
    %78 = tpu.matmul %77, %74, %cst_42 {dimension_numbers = #tpu.dot_dimension_numbers<[1], [0], [0], [1], [0, 0, 1, 1], [], []>} : vector<16x64xf32>, vector<64x2xf32>, vector<16x2xf32> -> vector<16x2xf32>
    %cst_43 = arith.constant dense<0.000000e+00> : vector<16x2xf32>
    %79 = tpu.matmul %77, %75, %cst_43 {dimension_numbers = #tpu.dot_dimension_numbers<[1], [0], [0], [1], [0, 0, 1, 1], [], []>} : vector<16x64xf32>, vector<64x2xf32>, vector<16x2xf32> -> vector<16x2xf32>
    %80 = tpu.transpose %79, [1, 0] : vector<16x2xf32> -> vector<2x16xf32>
    %81 = vector.extract_strided_slice %78 {offsets = [0, 0], sizes = [16, 1], strides = [1, 1]} : vector<16x2xf32> to vector<16x1xf32>
    %82 = vector.extract_strided_slice %80 {offsets = [0, 0], sizes = [1, 16], strides = [1, 1]} : vector<2x16xf32> to vector<1x16xf32>
    %83 = vector.broadcast %81 : vector<16x1xf32> to vector<16x16xf32>
    %84 = vector.broadcast %82 : vector<1x16xf32> to vector<16x16xf32>
    %85 = arith.addf %83, %84 : vector<16x16xf32>
    %cst_44 = arith.constant 0.000000e+00 : f32
    %86 = vector.broadcast %cst_44 : f32 to vector<16x16xf32>
    %87 = arith.cmpf ogt, %85, %86 : vector<16x16xf32>
    %cst_45 = arith.constant 2.000000e-01 : f32
    %88 = vector.broadcast %cst_45 : f32 to vector<16x16xf32>
    %89 = arith.mulf %88, %85 : vector<16x16xf32>
    %90 = arith.select %87, %85, %89 : vector<16x16xi1>, vector<16x16xf32>
    %cst_46 = arith.constant -1.000000e+30 : f32
    %91 = vector.broadcast %cst_46 : f32 to vector<16x16xf32>
    %92 = arith.select %2, %90, %91 : vector<16x16xi1>, vector<16x16xf32>
    %cst_47 = arith.constant dense<0xFF800000> : vector<16xf32>
    %93 = vector.multi_reduction <maximumf>, %92, %cst_47 [1] : vector<16x16xf32> to vector<16xf32>
    %94 = vector.shape_cast %93 : vector<16xf32> to vector<16x1xf32>
    %95 = vector.broadcast %94 : vector<16x1xf32> to vector<16x16xf32>
    %96 = arith.subf %92, %95 : vector<16x16xf32>
    %97 = math.exp %96 : vector<16x16xf32>
    %cst_48 = arith.constant dense<0.000000e+00> : vector<16xf32>
    %98 = vector.multi_reduction <add>, %97, %cst_48 [1] : vector<16x16xf32> to vector<16xf32>
    %99 = vector.shape_cast %98 : vector<16xf32> to vector<16x1xf32>
    %100 = tpu.reciprocal %99 {approx = true} : vector<16x1xf32> -> vector<16x1xf32>
    %101 = vector.broadcast %100 : vector<16x1xf32> to vector<16x16xf32>
    %102 = arith.mulf %97, %101 : vector<16x16xf32>
    %103 = vector.extract_strided_slice %77 {offsets = [0, 0], sizes = [16, 32], strides = [1, 1]} : vector<16x64xf32> to vector<16x32xf32>
    %cst_49 = arith.constant dense<0.000000e+00> : vector<16x32xf32>
    %104 = tpu.matmul %102, %103, %cst_49 {dimension_numbers = #tpu.dot_dimension_numbers<[1], [0], [0], [1], [0, 0, 1, 1], [], []>} : vector<16x16xf32>, vector<16x32xf32>, vector<16x32xf32> -> vector<16x32xf32>
    %105 = vector.extract_strided_slice %76 {offsets = [0, 0], sizes = [1, 32], strides = [1, 1]} : vector<1x64xf32> to vector<1x32xf32>
    %106 = vector.broadcast %105 : vector<1x32xf32> to vector<16x32xf32>
    %107 = arith.addf %104, %106 : vector<16x32xf32>
    %c0_50 = arith.constant 0 : index
    %c0_51 = arith.constant 0 : index
    %108 = vector.load %arg15[%c0_50, %c0_51] : memref<16x64xf32, #tpu.memory_space<vmem>>, vector<16x32xf32>
    tpu.vector_store %arg15[%c0_50, %c0_51], %107 {strides = array<i32>} : memref<16x64xf32, #tpu.memory_space<vmem>>, vector<16x32xf32>,
    %109 = vector.extract_strided_slice %78 {offsets = [0, 1], sizes = [16, 1], strides = [1, 1]} : vector<16x2xf32> to vector<16x1xf32>
    %110 = vector.extract_strided_slice %80 {offsets = [1, 0], sizes = [1, 16], strides = [1, 1]} : vector<2x16xf32> to vector<1x16xf32>
    %111 = vector.broadcast %109 : vector<16x1xf32> to vector<16x16xf32>
    %112 = vector.broadcast %110 : vector<1x16xf32> to vector<16x16xf32>
    %113 = arith.addf %111, %112 : vector<16x16xf32>
    %cst_52 = arith.constant 0.000000e+00 : f32
    %114 = vector.broadcast %cst_52 : f32 to vector<16x16xf32>
    %115 = arith.cmpf ogt, %113, %114 : vector<16x16xf32>
    %cst_53 = arith.constant 2.000000e-01 : f32
    %116 = vector.broadcast %cst_53 : f32 to vector<16x16xf32>
    %117 = arith.mulf %116, %113 : vector<16x16xf32>
    %118 = arith.select %115, %113, %117 : vector<16x16xi1>, vector<16x16xf32>
    %cst_54 = arith.constant -1.000000e+30 : f32
    %119 = vector.broadcast %cst_54 : f32 to vector<16x16xf32>
    %120 = arith.select %2, %118, %119 : vector<16x16xi1>, vector<16x16xf32>
    %cst_55 = arith.constant dense<0xFF800000> : vector<16xf32>
    %121 = vector.multi_reduction <maximumf>, %120, %cst_55 [1] : vector<16x16xf32> to vector<16xf32>
    %122 = vector.shape_cast %121 : vector<16xf32> to vector<16x1xf32>
    %123 = vector.broadcast %122 : vector<16x1xf32> to vector<16x16xf32>
    %124 = arith.subf %120, %123 : vector<16x16xf32>
    %125 = math.exp %124 : vector<16x16xf32>
    %cst_56 = arith.constant dense<0.000000e+00> : vector<16xf32>
    %126 = vector.multi_reduction <add>, %125, %cst_56 [1] : vector<16x16xf32> to vector<16xf32>
    %127 = vector.shape_cast %126 : vector<16xf32> to vector<16x1xf32>
    %128 = tpu.reciprocal %127 {approx = true} : vector<16x1xf32> -> vector<16x1xf32>
    %129 = vector.broadcast %128 : vector<16x1xf32> to vector<16x16xf32>
    %130 = arith.mulf %125, %129 : vector<16x16xf32>
    %131 = vector.extract_strided_slice %77 {offsets = [0, 32], sizes = [16, 32], strides = [1, 1]} : vector<16x64xf32> to vector<16x32xf32>
    %cst_57 = arith.constant dense<0.000000e+00> : vector<16x32xf32>
    %132 = tpu.matmul %130, %131, %cst_57 {dimension_numbers = #tpu.dot_dimension_numbers<[1], [0], [0], [1], [0, 0, 1, 1], [], []>} : vector<16x16xf32>, vector<16x32xf32>, vector<16x32xf32> -> vector<16x32xf32>
    %133 = vector.extract_strided_slice %76 {offsets = [0, 32], sizes = [1, 32], strides = [1, 1]} : vector<1x64xf32> to vector<1x32xf32>
    %134 = vector.broadcast %133 : vector<1x32xf32> to vector<16x32xf32>
    %135 = arith.addf %132, %134 : vector<16x32xf32>
    %c0_58 = arith.constant 0 : index
    %c32_59 = arith.constant 32 : index
    %136 = vector.load %arg15[%c0_58, %c32_59] : memref<16x64xf32, #tpu.memory_space<vmem>>, vector<16x32xf32>
    tpu.vector_store %arg15[%c0_58, %c32_59], %135 {strides = array<i32>} : memref<16x64xf32, #tpu.memory_space<vmem>>, vector<16x32xf32>,
    %c0_60 = arith.constant 0 : index
    %c0_61 = arith.constant 0 : index
    %137 = vector.load %arg11[%c0_60, %c0_61] : memref<8x16xf32, #tpu.memory_space<vmem>>, vector<8x16xf32>
    %c0_62 = arith.constant 0 : index
    %c0_63 = arith.constant 0 : index
    %138 = vector.load %arg12[%c0_62, %c0_63] : memref<16x64xf32, #tpu.memory_space<vmem>>, vector<16x64xf32>
    %cst_64 = arith.constant dense<0.000000e+00> : vector<8x64xf32>
    %139 = tpu.matmul %137, %138, %cst_64 {dimension_numbers = #tpu.dot_dimension_numbers<[1], [0], [0], [1], [0, 0, 1, 1], [], []>} : vector<8x16xf32>, vector<16x64xf32>, vector<8x64xf32> -> vector<8x64xf32>
    %c0_65 = arith.constant 0 : index
    %c0_66 = arith.constant 0 : index
    %140 = vector.load %arg13[%c0_65, %c0_66] : memref<1x64xf32, #tpu.memory_space<vmem>>, vector<1x64xf32>
    %141 = vector.broadcast %140 : vector<1x64xf32> to vector<8x64xf32>
    %142 = arith.addf %139, %141 : vector<8x64xf32>
    %c0_67 = arith.constant 0 : index
    %c0_68 = arith.constant 0 : index
    %143 = vector.load %arg14[%c0_67, %c0_68] : memref<8x64xf32, #tpu.memory_space<vmem>>, vector<8x64xf32>
    tpu.vector_store %arg14[%c0_67, %c0_68], %142 {strides = array<i32>} : memref<8x64xf32, #tpu.memory_space<vmem>>, vector<8x64xf32>,
    return
  }
  func.func @transform_0(%arg0: i32) -> (i32, i32) {
    %c0_i32 = arith.constant 0 : i32
    %c0_i32_0 = arith.constant 0 : i32
    %c0_i32_1 = arith.constant 0 : i32
    return %c0_i32, %c0_i32_0 : i32, i32
  }
  func.func @transform_1(%arg0: i32) -> (i32, i32) {
    %c0_i32 = arith.constant 0 : i32
    %c0_i32_0 = arith.constant 0 : i32
    %c0_i32_1 = arith.constant 0 : i32
    return %c0_i32, %c0_i32_0 : i32, i32
  }
  func.func @transform_2(%arg0: i32) -> (i32, i32) {
    %c0_i32 = arith.constant 0 : i32
    %c0_i32_0 = arith.constant 0 : i32
    %c0_i32_1 = arith.constant 0 : i32
    return %c0_i32, %c0_i32_0 : i32, i32
  }
  func.func @transform_3(%arg0: i32) -> (i32, i32) {
    %c0_i32 = arith.constant 0 : i32
    %c0_i32_0 = arith.constant 0 : i32
    %c0_i32_1 = arith.constant 0 : i32
    return %c0_i32, %c0_i32_0 : i32, i32
  }
  func.func @transform_4(%arg0: i32) -> (i32, i32) {
    %c0_i32 = arith.constant 0 : i32
    %c0_i32_0 = arith.constant 0 : i32
    %c0_i32_1 = arith.constant 0 : i32
    return %c0_i32, %c0_i32_0 : i32, i32
  }
  func.func @transform_5(%arg0: i32) -> (i32, i32) {
    %c0_i32 = arith.constant 0 : i32
    %c0_i32_0 = arith.constant 0 : i32
    %c0_i32_1 = arith.constant 0 : i32
    return %c0_i32, %c0_i32_0 : i32, i32
  }
  func.func @transform_6(%arg0: i32) -> (i32, i32) {
    %c0_i32 = arith.constant 0 : i32
    %c0_i32_0 = arith.constant 0 : i32
    %c0_i32_1 = arith.constant 0 : i32
    return %c0_i32, %c0_i32_0 : i32, i32
  }
  func.func @transform_7(%arg0: i32) -> (i32, i32) {
    %c0_i32 = arith.constant 0 : i32
    %c0_i32_0 = arith.constant 0 : i32
    %c0_i32_1 = arith.constant 0 : i32
    return %c0_i32, %c0_i32_0 : i32, i32
  }
  func.func @transform_8(%arg0: i32) -> (i32, i32) {
    %c0_i32 = arith.constant 0 : i32
    %c0_i32_0 = arith.constant 0 : i32
    %c0_i32_1 = arith.constant 0 : i32
    return %c0_i32, %c0_i32_0 : i32, i32
  }
  func.func @transform_9(%arg0: i32) -> (i32, i32) {
    %c0_i32 = arith.constant 0 : i32
    %c0_i32_0 = arith.constant 0 : i32
    %c0_i32_1 = arith.constant 0 : i32
    return %c0_i32, %c0_i32_0 : i32, i32
  }
  func.func @transform_10(%arg0: i32) -> (i32, i32) {
    %c0_i32 = arith.constant 0 : i32
    %c0_i32_0 = arith.constant 0 : i32
    %c0_i32_1 = arith.constant 0 : i32
    return %c0_i32, %c0_i32_0 : i32, i32
  }
  func.func @transform_11(%arg0: i32) -> (i32, i32) {
    %c0_i32 = arith.constant 0 : i32
    %c0_i32_0 = arith.constant 0 : i32
    %c0_i32_1 = arith.constant 0 : i32
    return %c0_i32, %c0_i32_0 : i32, i32
  }
  func.func @transform_12(%arg0: i32) -> (i32, i32) {
    %c0_i32 = arith.constant 0 : i32
    %c0_i32_0 = arith.constant 0 : i32
    %c0_i32_1 = arith.constant 0 : i32
    return %c0_i32, %c0_i32_0 : i32, i32
  }
  func.func @transform_13(%arg0: i32) -> (i32, i32) {
    %c0_i32 = arith.constant 0 : i32
    %c0_i32_0 = arith.constant 0 : i32
    %c0_i32_1 = arith.constant 0 : i32
    return %c0_i32, %c0_i32_0 : i32, i32
  }
  func.func @transform_14(%arg0: i32) -> (i32, i32) {
    %c0_i32 = arith.constant 0 : i32
    %c0_i32_0 = arith.constant 0 : i32
    %c0_i32_1 = arith.constant 0 : i32
    return %c0_i32, %c0_i32_0 : i32, i32
  }
}

</mosaic_0001>

<bundles_post_ra>
// kernel: squeeze.8
= control target key start
LH: loop header
LB: loop body
LE: loop exit
PB: predicated region body
PF: predicated region fallthrough
CT: control target
= control target key end

     0   :  { %vm7_vm0 = vcmask 261120   ;;  %vm13_vm1 = vcmask 523520   ;;  %s39_s0 = inlined_call_operand.vmem [shape: f32[2,32], index: 0, kind: input, shape index: {}]   ;;  %s40_s1 = inlined_call_operand.vmem [shape: f32[1,64], index: 1, kind: output, shape index: {}]  }
   0x1   :  { %v4_v0 = vld [vmem:[%s39_s0] sm:$0x3]  ;;  %s22_s0 = smov 32  }
   0x2   :  { %5 = vst [vmem:[#allocation1] sm:$0x3] %v4_v0 }
   0x9   :  { %v10_v1 = vld [vmem:[#allocation1 + $0x1] sm:$0x1]   ;;  %v6_v2 = vld [vmem:[#allocation1] sm:$0x1]  }
   0xa   :  { %11 = vrot.lane.b32.xlu0 %v10_v1, %s22_s0  ;;  %8 = vst.msk [vmem:[#allocation0] sm:$0x1] %vm7_vm0, %v6_v2  }
  0x7c   :  { %v12_v3 = vpop.permute.xlu0 %11  }
  0x7d   :  { %14 = vst.msk [vmem:[#allocation0] sm:$0x1] %vm13_vm1, %v12_v3  }
  0x84   :  { %v18_v4 = vld [vmem:[#allocation0] sm:$0x1] }
  0x85   :  { %20 = vst [vmem:[%s40_s1] sm:$0x1] %v18_v4 }

// kernel: gat_model_forward.1
= control target key start
LH: loop header
LB: loop body
LE: loop exit
PB: predicated region body
PF: predicated region fallthrough
CT: control target
= control target key end

     0   :  { %20 = vsyncpa [#allocation4], 0  ;;  %vm73_vm0 = vcmask 130048   ;;  %s2153_s0 = inlined_call_operand.vmem [shape: f32[16,16], index: 0, kind: input, shape index: {}]   ;;  %s2154_s1 = inlined_call_operand.vmem [shape: f32[16,16], index: 1, kind: input, shape index: {}]   ;;  %s2155_s2 = inlined_call_operand.vmem [shape: f32[16,64], index: 2, kind: input, shape index: {}]   ;;  %s2156_s3 = inlined_call_operand.vmem [shape: f32[64,2], index: 3, kind: input, shape index: {}]   ;;  %s2157_s4 = inlined_call_operand.vmem [shape: f32[64,2], index: 4, kind: input, shape index: {}]   ;;  %s2158_s5 = inlined_call_operand.vmem [shape: f32[1,64], index: 5, kind: input, shape index: {}]   ;;  %s2159_s6 = inlined_call_operand.vmem [shape: f32[64,64], index: 6, kind: input, shape index: {}]   ;;  %s2160_s7 = inlined_call_operand.vmem [shape: f32[64,2], index: 7, kind: input, shape index: {}]   ;;  %s2161_s8 = inlined_call_operand.vmem [shape: f32[64,2], index: 8, kind: input, shape index: {}]   ;;  %s2162_s9 = inlined_call_operand.vmem [shape: f32[1,64], index: 9, kind: input, shape index: {}]   ;;  %s2163_s10 = inlined_call_operand.vmem [shape: f32[8,16], index: 10, kind: input, shape index: {}]   ;;  %s2164_s11 = inlined_call_operand.vmem [shape: f32[16,64], index: 11, kind: input, shape index: {}]   ;;  %s2165_s12 = inlined_call_operand.vmem [shape: f32[1,64], index: 12, kind: input, shape index: {}]   ;;  %s2166_s13 = inlined_call_operand.hbm [shape: f32[8,64], index: 13, kind: output, shape index: {0}]   ;;  %s2167_s14 = inlined_call_operand.hbm [shape: f32[16,64], index: 14, kind: output, shape index: {1}]  }
   0x1   :  { %v54_v0 = vld [vmem:[%s2155_s2] sm:$0xff]  ;;  %v55_v1 = vld [vmem:[%s2155_s2 + $0x8] sm:$0xff]  ;;  %v58_v9 = vld [vmem:[%s2156_s3 + $0x10] sm:$0xff] }
   0x2   :  { %v52_v2 = vld [vmem:[%s2153_s0] sm:$0xff]  ;;  %v1552_v3 = vpack.c.bf16 %v55_v1, %v54_v0  ;;  %v57_v5 = vld [vmem:[%s2156_s3 + $0x8] sm:$0xff]  ;;  %v59_v11 = vld [vmem:[%s2156_s3 + $0x18] sm:$0xff] }
   0x3   :  { %1419 = vmatprep.mubr.msk.f32.mxu0 %vm73_vm0, %v52_v2  ;;  %v56_v4 = vld [vmem:[%s2156_s3] sm:$0xff]  ;;  %v65_v8 = vld [vmem:[%s2157_s4 + $0x8] sm:$0xff]  ;;  %v66_v12 = vld [vmem:[%s2157_s4 + $0x10] sm:$0xff]  ;;  %v1560_v15 = vpack.c.bf16 %v59_v11, %v58_v9 }
   0x4   :  { %v1556_v6 = vpack.c.bf16 %v57_v5, %v56_v4  ;;  %v64_v7 = vld [vmem:[%s2157_s4] sm:$0xff]  ;;  %1553 = vmatprep.subr.bf16.mxu0 %v1552_v3  ;;  %v67_v13 = vld [vmem:[%s2157_s4 + $0x18] sm:$0xff]  ;;  %v53_v14 = vld [vmem:[%s2153_s0 + $0x8] sm:$0xff] }
   0x5   :  { %v1572_v10 = vpack.c.bf16 %v65_v8, %v64_v7  ;;  %1555 = vmatpush3.bf16.msra.mxu0 %v1552_v3  ;;  %v60_v16 = vld [vmem:[%s2156_s3 + $0x20] sm:$0xff]  ;;  %v61_v17 = vld [vmem:[%s2156_s3 + $0x28] sm:$0xff]  ;;  %v1576_v18 = vpack.c.bf16 %v67_v13, %v66_v12 }
   0x6   :  { %1557 = vmatprep.subr.bf16.mxu1 %v1556_v6  ;;  %v1564_v19 = vpack.c.bf16 %v61_v17, %v60_v16  ;;  %v68_v20 = vld [vmem:[%s2157_s4 + $0x20] sm:$0xff]  ;;  %v69_v21 = vld [vmem:[%s2157_s4 + $0x28] sm:$0xff] }
   0x7   :  { %1573 = vmatprep.subr.bf16.mxu0 %v1572_v10  ;;  %1559 = vmatpush3.bf16.msra.mxu1 %v1556_v6 }
   0x8   :  { %1561 = vmatprep.subr.bf16.mxu1 %v1560_v15 }
   0x9   :  { %21 = vsyncpa [#allocation6], 0  ;;  %1420 = vmatmul.mubr.msk.f32.vlgmr.msra.gmra.mrb[0].mxu0 %vm73_vm0, %v53_v14  ;;  %v62_v22 = vld [vmem:[%s2156_s3 + $0x30] sm:$0xff]  ;;  %v63_v23 = vld [vmem:[%s2156_s3 + $0x38] sm:$0xff]  ;;  %v1580_v24 = vpack.c.bf16 %v69_v21, %v68_v20  ;;  %vm155_vm1 = vcmask 523264   ;;  %v1761_v33 = vmov 1   ;;  %v354_v39 = vlaneseq }
   0xa   :  { %1575 = vmatpush3.bf16.msra.mxu0 %v1572_v10  ;;  %v1568_v25 = vpack.c.bf16 %v63_v23, %v62_v22  ;;  %v70_v26 = vld [vmem:[%s2157_s4 + $0x30] sm:$0xff]  ;;  %v71_v27 = vld [vmem:[%s2157_s4 + $0x38] sm:$0xff]  ;;  %1666 = vset.pattern.permute.xlu0 %v1761_v33  ;;  %v1762_v38 = vmov 0   ;;  %v1935_v45 = vld [vmem:[%s2154_s1] sm:$0xff]  ;;  %vm479_vm8 = vcmask 261120   ;;  %vm626_vm9 = vcmask 523520  }
   0xb   :  { %1577 = vmatprep.subr.bf16.mxu0 %v1576_v18  ;;  %1563 = vmatpush3.bf16.msra.mxu1 %v1560_v15  ;;  %v1584_v28 = vpack.c.bf16 %v71_v27, %v70_v26  ;;  %v1927_v40 = vshrl.u32 %v354_v39, 7  ;;  %v1941_v49 = vld [vmem:[%s2154_s1 + $0x8] sm:$0xff]  ;;  %vm50_vm2 = vcmp.gt.f32.partialorder %v1935_v45, 0.0  ;;  %s1763_s1 = smov 96   ;;  %vm1766_vm14 = vmmov 0  }
   0xc   :  { %1565 = vmatprep.subr.bf16.mxu1 %v1564_v19  ;;  %vm51_vm4 = vcmp.gt.f32.partialorder %v1941_v49, 0.0 }
   0xd   :  { %v492_v41 = vsub.s32 1, %v1927_v40  ;;  %v356_v46 = vsub.s32 0, %v1927_v40 }
   0xe   :  { %1579 = vmatpush3.bf16.msra.mxu0 %v1576_v18 }
   0xf   :  { %1581 = vmatprep.subr.bf16.mxu0 %v1580_v24  ;;  %1567 = vmatpush3.bf16.msra.mxu1 %v1564_v19 }
  0x10   :  { %1569 = vmatprep.subr.bf16.mxu1 %v1568_v25 }
  0x12   :  { %1583 = vmatpush3.bf16.msra.mxu0 %v1580_v24 }
  0x13   :  { %1585 = vmatprep.subr.bf16.mxu0 %v1584_v28  ;;  %1571 = vmatpush3.bf16.msra.mxu1 %v1568_v25 }
  0x16   :  { %1587 = vmatpush3.bf16.msra.mxu0 %v1584_v28  ;;  %v1970_v28 = vld [vmem:[%s2158_s5] ss:$0 sm:$0xff]  ;;  %s1764_s5 = smov 32  }
  0xdc   :  { %v1909_v29 = vpop.f32.mrb[0].mxu0 }
  0xdd   :  { %v1911_v30 = vpop.f32.mrb[1].mxu0 }
  0xde   :  { %1438 = vmatprep.mubr.msk.f32.mxu1 %vm155_vm1, %v1911_v30  ;;  %1457 = vmatprep.mubr.msk.f32.mxu0 %vm155_vm1, %v1911_v30  ;;  %v1588_v31 = vpack.c.bf16 %v1909_v29, %v1911_v30  ;;  %v1669_v32 = vpack.i.bf16 %v1909_v29, %v1911_v30 }
  0xdf   :  { %1439 = vmatmul.mubr.msk.f32.vlgmr.msra.gmra.mrb[0].mxu1 %vm155_vm1, %v1909_v29  ;;  %1458 = vmatmul.mubr.msk.f32.vlgmr.msra.gmra.mrb[2].mxu0 %vm155_vm1, %v1909_v29 }
  0xe0   :  { %1589 = vmatprep.subr.bf16.mxu1 %v1588_v31 }
  0xe1   :  { %1591 = vmatpush3.bf16.msra.mxu1 %v1588_v31 }
 0x1b2   :  { %v1440_v34 = vpop.f32.mrb[0].mxu1  ;;  %v1459_v35 = vpop.f32.mrb[2].mxu0 }
 0x1b3   :  { %v228_v36 = vpop.f32.mrb[1].mxu1  ;;  %v303_v37 = vpop.f32.mrb[3].mxu0 }
 0x1b4   :  { %312 = vxpose.xlu1.b32.start [1/2] (short) (narrow) %v303_v37, 8  ;;  %483 = vperm.xlu0 %1666, %v228_v36  }
 0x1b8   :  { %313 = vxpose.xlu1.b32.end [2/2] (short) (narrow) %v1459_v35, 8  ;;  %487 = vperm.xlu0 %1666, %v1440_v34  }
 0x1bc   :  { %1667 = vset.pattern.permute.xlu0 %v1762_v38 }
 0x1bd   :  { %346 = vperm.xlu0 %1667, %v228_v36  }
 0x1d6   :  { %1668 = vset.pattern.permute.xlu1 %v1762_v38 }
 0x1d7   :  { %351 = vperm.xlu1 %1668, %v1440_v34  }
 0x1db   :  { %1675 = vset.pattern.permute.xlu1 %v1761_v33 }
 0x233   :  { %v484_v42 = vpop.permute.xlu0 %483 }
 0x234   :  { %v328_v43 = vpop.trf.xlu1 }
 0x235   :  { %v493_v44 = vrot.slane %v328_v43, %v492_v41  ;;  %v357_v53 = vrot.slane %v328_v43, %v356_v46 }
 0x237   :  { %v494_v47 = vadd.f32 %v493_v44, %v484_v42  ;;  %v488_v48 = vpop.permute.xlu0 %487 }
 0x238   :  { %v495_v50 = vadd.f32 %v493_v44, %v488_v48 }
 0x239   :  { %vm496_vm3 = vcmp.gt.f32.partialorder %v494_v47, 0.0  ;;  %v498_v51 = vmul.f32 0.2, %v494_v47 }
 0x23a   :  { %v499_v52 = vmul.f32 0.2, %v495_v50  ;;  %vm497_vm5 = vcmp.gt.f32.partialorder %v495_v50, 0.0 }
 0x23b   :  { %v500_v54 = vsel %vm496_vm3, %v494_v47, %v498_v51  ;;  %v631_v51 = vld [vmem:[%s2159_s6] sm:$0xff] }
 0x23c   :  { %v347_v55 = vpop.permute.xlu0 %346  ;;  %v502_v56 = vsel %vm50_vm2, %v500_v54, -1e+30  ;;  %v501_v57 = vsel %vm497_vm5, %v495_v50, %v499_v52  ;;  %v632_v52 = vld [vmem:[%s2159_s6 + $0x8] sm:$0xff]  ;;  %v633_v54 = vld [vmem:[%s2159_s6 + $0x10] sm:$0xff] }
 0x23d   :  { %v358_v58 = vadd.f32 %v357_v53, %v347_v55  ;;  %v504_v59 = vsel %vm73_vm0, %v502_v56, -inf  ;;  %v503_v60 = vsel %vm51_vm4, %v501_v57, -1e+30  ;;  %v634_v55 = vld [vmem:[%s2159_s6 + $0x18] sm:$0xff]  ;;  %v635_v57 = vld [vmem:[%s2159_s6 + $0x20] sm:$0xff] }
 0x23e   :  { %505 = vmax.xlane.f32.xlu0 %v504_v59  ;;  %v507_v61 = vsel %vm73_vm0, %v503_v60, -inf }
 0x23f   :  { %v362_v62 = vmul.f32 0.2, %v358_v58  ;;  %508 = vmax.xlane.f32.xlu1 %v507_v61  ;;  %vm360_vm6 = vcmp.gt.f32.partialorder %v358_v58, 0.0  ;;  %v638_v61 = vld [vmem:[%s2159_s6 + $0x38] sm:$0xff] }
 0x241   :  { %v364_v63 = vsel %vm360_vm6, %v358_v58, %v362_v62  ;;  %v636_v58 = vld [vmem:[%s2159_s6 + $0x28] sm:$0xff] }
 0x242   :  { %v366_v0 = vsel %vm50_vm2, %v364_v63, -1e+30  ;;  %v1604_v59 = vpack.c.bf16 %v636_v58, %v635_v57 }
 0x243   :  { %v368_v1 = vsel %vm73_vm0, %v366_v0, -inf }
 0x244   :  { %369 = vmax.xlane.f32.xlu0 %v368_v1 }
 0x256   :  { %v352_v2 = vpop.permute.xlu1 %351 }
 0x257   :  { %v359_v3 = vadd.f32 %v357_v53, %v352_v2  ;;  %v1596_v53 = vpack.c.bf16 %v632_v52, %v631_v51 }
 0x259   :  { %v363_v4 = vmul.f32 0.2, %v359_v3  ;;  %vm361_vm7 = vcmp.gt.f32.partialorder %v359_v3, 0.0  ;;  %1597 = vmatprep.subr.bf16.mxu1 %v1596_v53 }
 0x25b   :  { %v365_v5 = vsel %vm361_vm7, %v359_v3, %v363_v4 }
 0x25c   :  { %v367_v6 = vsel %vm51_vm4, %v365_v5, -1e+30  ;;  %v639_v5 = vld [vmem:[%s2160_s7] sm:$0xff] }
 0x25d   :  { %v371_v7 = vsel %vm73_vm0, %v367_v6, -inf }
 0x25e   :  { %372 = vmax.xlane.f32.xlu0 %v371_v7  ;;  %v647_v7 = vld [vmem:[%s2161_s8] sm:$0xff] }
 0x2cb   :  { %v506_v8 = vpop.xlane.xlu0 %505 }
 0x2cc   :  { %v510_v9 = vsub.f32 %v502_v56, %v506_v8  ;;  %v509_v10 = vpop.xlane.xlu1 %508  ;;  %v1600_v56 = vpack.c.bf16 %v634_v55, %v633_v54 }
 0x2cd   :  { %v511_v11 = vsub.f32 %v503_v60, %v509_v10  ;;  %v637_v60 = vld [vmem:[%s2159_s6 + $0x30] sm:$0xff] }
 0x2ce   :  { %v512_v12 = vmul.f32 1.442695, %v510_v9  ;;  %v1608_v62 = vpack.c.bf16 %v638_v61, %v637_v60  ;;  %v648_v9 = vld [vmem:[%s2161_s8 + $0x8] sm:$0xff]  ;;  %v641_v10 = vld [vmem:[%s2160_s7 + $0x10] sm:$0xff] }
 0x2cf   :  { %v514_v13 = vmul.f32 1.442695, %v511_v11  ;;  %v642_v11 = vld [vmem:[%s2160_s7 + $0x18] sm:$0xff] }
 0x2d1   :  { %1681 = vpow2.f32 %v514_v13  ;;  %v370_v14 = vpop.xlane.xlu0 %369  ;;  %v1616_v13 = vpack.c.bf16 %v642_v11, %v641_v10 }
 0x2d2   :  { %v374_v15 = vsub.f32 %v366_v0, %v370_v14  ;;  %1683 = vpow2.f32 %v512_v12  ;;  %v1628_v12 = vpack.c.bf16 %v648_v9, %v647_v7 }
 0x2d4   :  { %v376_v16 = vmul.f32 1.442695, %v374_v15  ;;  %v643_v15 = vld [vmem:[%s2160_s7 + $0x20] sm:$0xff] }
 0x2d6   :  { %1685 = vpow2.f32 %v376_v16  ;;  %v644_v16 = vld [vmem:[%s2160_s7 + $0x28] sm:$0xff] }
 0x2db   :  { %v1682_v17 = vpop.eup %1681 }
 0x2dc   :  { %v519_v18 = vsel %vm73_vm0, %v1682_v17, 0.0  ;;  %v1684_v19 = vpop.eup %1683 }
 0x2dd   :  { %520 = vadd.xlane.f32.xlu0 %v519_v18  ;;  %v516_v21 = vsel %vm73_vm0, %v1684_v19, 0.0  ;;  %v645_v18 = vld [vmem:[%s2160_s7 + $0x30] sm:$0xff] }
 0x2e0   :  { %v1686_v20 = vpop.eup %1685 }
 0x2e1   :  { %517 = vadd.xlane.f32.xlu0 %v516_v21  ;;  %v380_v22 = vsel %vm73_vm0, %v1686_v20, 0.0 }
 0x2e2   :  { %381 = vadd.xlane.f32.xlu1 %v380_v22 }
 0x2eb   :  { %v373_v23 = vpop.xlane.xlu0 %372 }
 0x2ec   :  { %v375_v24 = vsub.f32 %v367_v6, %v373_v23  ;;  %v640_v6 = vld [vmem:[%s2160_s7 + $0x8] sm:$0xff] }
 0x2ed   :  { %v1612_v8 = vpack.c.bf16 %v640_v6, %v639_v5 }
 0x2ee   :  { %v378_v25 = vmul.f32 1.442695, %v375_v24 }
 0x2f0   :  { %1687 = vpow2.f32 %v378_v25 }
 0x2f7   :  { %1670 = vrot.lane.b32.xlu0 %v1669_v32, %s1763_s1 }
 0x2fa   :  { %v1688_v26 = vpop.eup %1687 }
 0x2fb   :  { %v383_v27 = vsel %vm73_vm0, %v1688_v26, 0.0 }
 0x2fc   :  { %384 = vadd.xlane.f32.xlu1 %v383_v27 }
 0x30d   :  { %532 = vrot.lane.b32.xlu1 %v1970_v28, %s1763_s1 }
 0x36a   :  { %v521_v31 = vpop.xlane.xlu0 %520 }
 0x36b   :  { %1689 = vrcp.f32 %v521_v31 }
 0x36e   :  { %v518_v34 = vpop.xlane.xlu0 %517 }
 0x36f   :  { %1691 = vrcp.f32 %v518_v34  ;;  %v382_v35 = vpop.xlane.xlu1 %381 }
 0x370   :  { %1693 = vrcp.f32 %v382_v35  ;;  %v649_v35 = vld [vmem:[%s2161_s8 + $0x10] sm:$0xff] }
 0x372   :  { %v1671_v29 = vpop.permute.xlu0 %1670 }
 0x373   :  { %v1673_v30 = vunpack.i.h.bf16 %v1671_v29  ;;  %v1672_v32 = vunpack.i.l.bf16 %v1671_v29 }
 0x375   :  { %v1592_v36 = vpack.c.bf16 %v1673_v30, %v1672_v32  ;;  %v1690_v37 = vpop.eup %1689  ;;  %v651_v32 = vld [vmem:[%s2161_s8 + $0x20] sm:$0xff] }
 0x376   :  { %v525_v43 = vmul.f32 %v1690_v37, %v1682_v17  ;;  %v1620_v17 = vpack.c.bf16 %v644_v16, %v643_v15 }
 0x377   :  { %1593 = vmatprep.subr.bf16.mxu0 %v1592_v36 }
 0x378   :  { %1595 = vmatpush3.bf16.msra.mxu0 %v1592_v36  ;;  %v652_v36 = vld [vmem:[%s2161_s8 + $0x28] sm:$0xff] }
 0x379   :  { %v1692_v38 = vpop.eup %1691  ;;  %1613 = vmatprep.subr.bf16.mxu0 %v1612_v8  ;;  %v1636_v37 = vpack.c.bf16 %v652_v36, %v651_v32 }
 0x37a   :  { %v1694_v39 = vpop.eup %1693  ;;  %v524_v42 = vmul.f32 %v1692_v38, %v1684_v19  ;;  %v646_v19 = vld [vmem:[%s2160_s7 + $0x38] sm:$0xff]  ;;  %v653_v38 = vld [vmem:[%s2161_s8 + $0x30] sm:$0xff] }
 0x37b   :  { %v388_v44 = vmul.f32 %v1694_v39, %v1686_v20  ;;  %v1624_v20 = vpack.c.bf16 %v646_v19, %v645_v18  ;;  %v654_v39 = vld [vmem:[%s2161_s8 + $0x38] sm:$0xff] }
 0x37c   :  { %1471 = vmatprep.mubr.msk.f32.mxu0 %vm73_vm0, %v524_v42  ;;  %v1640_v42 = vpack.c.bf16 %v654_v39, %v653_v38 }
 0x37d   :  { %1464 = vmatprep.mubr.msk.f32.mxu1 %vm73_vm0, %v388_v44  ;;  %1472 = vmatmul.mubr.msk.f32.vlgmr.msra.gmra.mrb[4].mxu0 %vm73_vm0, %v525_v43 }
 0x37e   :  { %1615 = vmatpush3.bf16.msra.mxu0 %v1612_v8 }
 0x37f   :  { %1617 = vmatprep.subr.bf16.mxu0 %v1616_v13 }
 0x382   :  { %1619 = vmatpush3.bf16.msra.mxu0 %v1616_v13 }
 0x383   :  { %1621 = vmatprep.subr.bf16.mxu0 %v1620_v17 }
 0x386   :  { %1623 = vmatpush3.bf16.msra.mxu0 %v1620_v17 }
 0x387   :  { %1625 = vmatprep.subr.bf16.mxu0 %v1624_v20 }
 0x389   :  { %v385_v47 = vpop.xlane.xlu1 %384 }
 0x38a   :  { %1695 = vrcp.f32 %v385_v47  ;;  %1627 = vmatpush3.bf16.msra.mxu0 %v1624_v20 }
 0x38d   :  { %v533_v63 = vpop.permute.xlu1 %532 }
 0x394   :  { %v1696_v48 = vpop.eup %1695 }
 0x395   :  { %v389_v50 = vmul.f32 %v1696_v48, %v1688_v26 }
 0x397   :  { %1465 = vmatmul.mubr.msk.f32.vlgmr.msra.gmra.mrb[2].mxu1 %vm73_vm0, %v389_v50 }
 0x398   :  { %1599 = vmatpush3.bf16.msra.mxu1 %v1596_v53 }
 0x399   :  { %1601 = vmatprep.subr.bf16.mxu1 %v1600_v56 }
 0x39c   :  { %1603 = vmatpush3.bf16.msra.mxu1 %v1600_v56 }
 0x39d   :  { %1605 = vmatprep.subr.bf16.mxu1 %v1604_v59 }
 0x3a0   :  { %1607 = vmatpush3.bf16.msra.mxu1 %v1604_v59 }
 0x3a1   :  { %1609 = vmatprep.subr.bf16.mxu1 %v1608_v62 }
 0x3a4   :  { %1611 = vmatpush3.bf16.msra.mxu1 %v1608_v62 }
 0x3a5   :  { %1629 = vmatprep.subr.bf16.mxu1 %v1628_v12 }
 0x450   :  { %v1473_v0 = vpop.f32.mrb[4].mxu0 }
 0x451   :  { %v607_v1 = vpop.f32.mrb[5].mxu0  ;;  %v613_v3 = vadd.f32 %v1473_v0, %v533_v63 }
 0x452   :  { %v608_v2 = vadd.f32 %v607_v1, %v533_v63 }
 0x453   :  { %v617_v14 = vmax.f32 %v613_v3, 0.0 }
 0x454   :  { %v616_v4 = vmax.f32 %v608_v2, 0.0 }
 0x456   :  { %620 = vrot.lane.b32.xlu0 %v616_v4, %s1764_s5 }
 0x45a   :  { %622 = vrot.lane.b32.xlu0 %v617_v14, %s1764_s5 }
 0x46a   :  { %v1466_v21 = vpop.f32.mrb[2].mxu1 }
 0x46b   :  { %v474_v22 = vadd.f32 %v1466_v21, %v1970_v28  ;;  %v468_v23 = vpop.f32.mrb[3].mxu1 }
 0x46c   :  { %v469_v24 = vadd.f32 %v1970_v28, %v468_v23  ;;  %v650_v28 = vld [vmem:[%s2161_s8 + $0x18] sm:$0xff] }
 0x46d   :  { %v478_v25 = vmax.f32 %v474_v22, 0.0  ;;  %v1632_v29 = vpack.c.bf16 %v650_v28, %v649_v35  ;;  %v1335_v28 = vld [vmem:[%s2162_s9] ss:$0 sm:$0xff] }
 0x46e   :  { %v477_v26 = vmax.f32 %v469_v24, 0.0 }
 0x46f   :  { %481 = vst.msk [vmem:[#allocation2 + $0x8] sm:$0xff] %vm479_vm8, %v478_v25 }
 0x470   :  { %480 = vst.msk [vmem:[#allocation2] sm:$0xff] %vm479_vm8, %v477_v26 }
 0x4c8   :  { %v621_v27 = vpop.permute.xlu0 %620 }
 0x4c9   :  { %627 = vst.msk [vmem:[#allocation2] sm:$0xff] %vm626_vm9, %v621_v27 }
 0x4cc   :  { %v623_v31 = vpop.permute.xlu0 %622 }
 0x4cd   :  { %628 = vst.msk [vmem:[#allocation2 + $0x8] sm:$0xff] %vm626_vm9, %v623_v31 }
 0x4d0   :  { %v629_v34 = vld [vmem:[#allocation2] sm:$0xff] }
 0x4d1   :  { %1490 = vmatprep.mubr.msk.f32.mxu1 %vm155_vm1, %v629_v34 }
 0x4d4   :  { %v630_v30 = vld [vmem:[#allocation2 + $0x8] sm:$0xff] }
 0x4d5   :  { %1491 = vmatmul.mubr.msk.f32.vlgmr.msra.gmra.mrb[4].mxu1 %vm155_vm1, %v630_v30 }
 0x4d6   :  { %1631 = vmatpush3.bf16.msra.mxu1 %v1628_v12 }
 0x4d7   :  { %1633 = vmatprep.subr.bf16.mxu1 %v1632_v29 }
 0x4da   :  { %1635 = vmatpush3.bf16.msra.mxu1 %v1632_v29 }
 0x4db   :  { %1637 = vmatprep.subr.bf16.mxu1 %v1636_v37 }
 0x4de   :  { %1639 = vmatpush3.bf16.msra.mxu1 %v1636_v37 }
 0x4df   :  { %1641 = vmatprep.subr.bf16.mxu1 %v1640_v42 }
 0x4e2   :  { %1643 = vmatpush3.bf16.msra.mxu1 %v1640_v42 }
 0x5a8   :  { %v2060_v43 = vpop.f32.mrb[4].mxu1 }
 0x5a9   :  { %v2062_v44 = vpop.f32.mrb[5].mxu1 }
 0x5aa   :  { %1509 = vmatprep.mubr.msk.f32.mxu0 %vm155_vm1, %v2062_v44  ;;  %1528 = vmatprep.mubr.msk.f32.mxu1 %vm155_vm1, %v2062_v44  ;;  %v1644_v47 = vpack.c.bf16 %v2060_v43, %v2062_v44  ;;  %v1676_v48 = vpack.i.bf16 %v2060_v43, %v2062_v44 }
 0x5ab   :  { %1510 = vmatmul.mubr.msk.f32.vlgmr.msra.gmra.mrb[6].mxu0 %vm155_vm1, %v2060_v43  ;;  %1529 = vmatmul.mubr.msk.f32.vlgmr.msra.gmra.mrb[6].mxu1 %vm155_vm1, %v2060_v43 }
 0x5ac   :  { %1645 = vmatprep.subr.bf16.mxu0 %v1644_v47 }
 0x5ad   :  { %1647 = vmatpush3.bf16.msra.mxu0 %v1644_v47 }
 0x67e   :  { %v1511_v50 = vpop.f32.mrb[6].mxu0  ;;  %v1530_v51 = vpop.f32.mrb[6].mxu1 }
 0x67f   :  { %v884_v52 = vpop.f32.mrb[7].mxu1  ;;  %932 = vperm.xlu0 %1667, %v1511_v50   ;;  %v809_v53 = vpop.f32.mrb[7].mxu0 }
 0x680   :  { %1061 = vperm.xlu1 %1675, %v809_v53  }
 0x683   :  { %927 = vperm.xlu0 %1667, %v809_v53  }
 0x687   :  { %1674 = vset.pattern.permute.xlu0 %v1761_v33 }
 0x688   :  { %1065 = vperm.xlu0 %1674, %v1511_v50   ;;  %v1205_v50 = vld [vmem:[%s2164_s11] sm:$0xff] }
 0x6a9   :  { %893 = vxpose.xlu1.b32.start [1/2] (short) (narrow) %v884_v52, 8 }
 0x6ad   :  { %894 = vxpose.xlu1.b32.end [2/2] (short) (narrow) %v1530_v51, 8  ;;  %v1206_v51 = vld [vmem:[%s2164_s11 + $0x8] sm:$0xff] }
 0x6fe   :  { %v933_v54 = vpop.permute.xlu0 %932 }
 0x6ff   :  { %v1062_v55 = vpop.permute.xlu1 %1061 }
 0x702   :  { %v928_v56 = vpop.permute.xlu0 %927 }
 0x707   :  { %v1066_v0 = vpop.permute.xlu0 %1065 }
 0x729   :  { %v909_v57 = vpop.trf.xlu1 }
 0x72a   :  { %v938_v58 = vrot.slane %v909_v57, %v356_v46  ;;  %v1071_v59 = vrot.slane %v909_v57, %v492_v41 }
 0x72c   :  { %v939_v60 = vadd.f32 %v938_v58, %v928_v56  ;;  %v940_v61 = vadd.f32 %v938_v58, %v933_v54  ;;  %v1072_v62 = vadd.f32 %v1071_v59, %v1062_v55  ;;  %v1073_v1 = vadd.f32 %v1071_v59, %v1066_v0  ;;  %v1204_v59 = vld [vmem:[%s2163_s10] sm:$0xff]  ;;  %s1768_s10 = smov [#allocation3]  }
 0x72d   :  { %v1765_v54 = vmov 0.0|0.0   ;;  %v1653_v56 = vpack.c.bf16 %v1206_v51, %v1205_v50  ;;  %v1767_v58 = vmov 0.0   ;;  %s1294_s30 = sshll.u32 %s1768_s10, 4  ;;  %s1295_s30 = int_to_ptr.vmem [resolvable:$true] %s1294_s30 }
 0x72e   :  { %vm942_vm10 = vcmp.gt.f32.partialorder %v940_v61, 0.0  ;;  %v944_v63 = vmul.f32 0.2, %v940_v61  ;;  %vm941_vm11 = vcmp.gt.f32.partialorder %v939_v60, 0.0  ;;  %v943_v33 = vmul.f32 0.2, %v939_v60  ;;  %p1718_p1 = scmp.lt.s32.totalorder %s1295_s30, %s1295_s30 }
 0x72f   :  { %v1076_v4 = vmul.f32 0.2, %v1072_v62  ;;  %vm1074_vm12 = vcmp.gt.f32.partialorder %v1072_v62, 0.0  ;;  %v1077_v6 = vmul.f32 0.2, %v1073_v1  ;;  %vm1075_vm13 = vcmp.gt.f32.partialorder %v1073_v1, 0.0 }
 0x730   :  { %v946_v2 = vsel %vm942_vm10, %v940_v61, %v944_v63  ;;  %v945_v3 = vsel %vm941_vm11, %v939_v60, %v943_v33  ;;  %s1713_s15 = scalar_lea.vmem %s1295_s30, 128 }
 0x731   :  { %v948_v5 = vsel %vm51_vm4, %v946_v2, -1e+30  ;;  %v947_v40 = vsel %vm50_vm2, %v945_v3, -1e+30  ;;  %v1078_v41 = vsel %vm1074_vm12, %v1072_v62, %v1076_v4  ;;  %v1079_v9 = vsel %vm1075_vm13, %v1073_v1, %v1077_v6  ;;  %v1340_v4 = vld [vmem:[%s2165_s12] ss:$0 sm:$0xff]  ;;  %p1714_p0 = scmp.ne.s32.totalorder %s1295_s30, %s1713_s15  ;;  %p1719_p2 = scmp.lt.s32.totalorder %s1713_s15, %s1713_s15 }
 0x732   :  { %v952_v46 = vsel %vm73_vm0, %v948_v5, -inf  ;;  %v949_v7 = vsel %vm73_vm0, %v947_v40, -inf  ;;  %v1080_v8 = vsel %vm50_vm2, %v1078_v41, -1e+30  ;;  %v1081_v11 = vsel %vm51_vm4, %v1079_v9, -1e+30 }
 0x733   :  { %953 = vmax.xlane.f32.xlu0 %v952_v46  ;;  %v1082_v10 = vsel %vm73_vm0, %v1080_v8, -inf  ;;  %v1085_v12 = vsel %vm73_vm0, %v1081_v11, -inf  ;;  %p1720_p3 = por %p1719_p2, %p1718_p1 }
 0x735   :  { %p1721_p4 = pnand %p1720_p3, %p1714_p0 }
 0x737   :  { %950 = vmax.xlane.f32.xlu0 %v949_v7 }
 0x73b   :  { %1083 = vmax.xlane.f32.xlu0 %v1082_v10 }
 0x73f   :  { %1086 = vmax.xlane.f32.xlu0 %v1085_v12 }
 0x7c0   :  { %v954_v13 = vpop.xlane.xlu0 %953 }
 0x7c1   :  { %v956_v14 = vsub.f32 %v948_v5, %v954_v13 }
 0x7c3   :  { %v959_v15 = vmul.f32 1.442695, %v956_v14 }
 0x7c4   :  { %v951_v16 = vpop.xlane.xlu0 %950 }
 0x7c5   :  { %1697 = vpow2.f32 %v959_v15  ;;  %v955_v17 = vsub.f32 %v947_v40, %v951_v16 }
 0x7c7   :  { %v957_v18 = vmul.f32 1.442695, %v955_v17 }
 0x7c8   :  { %v1084_v19 = vpop.xlane.xlu0 %1083 }
 0x7c9   :  { %1699 = vpow2.f32 %v957_v18  ;;  %v1088_v45 = vsub.f32 %v1080_v8, %v1084_v19 }
 0x7cb   :  { %v1090_v23 = vmul.f32 1.442695, %v1088_v45 }
 0x7cc   :  { %v1087_v20 = vpop.xlane.xlu0 %1086 }
 0x7cd   :  { %v1089_v21 = vsub.f32 %v1081_v11, %v1087_v20 }
 0x7cf   :  { %v1698_v22 = vpop.eup %1697  ;;  %v1092_v24 = vmul.f32 1.442695, %v1089_v21 }
 0x7d0   :  { %v964_v49 = vsel %vm73_vm0, %v1698_v22, 0.0 }
 0x7d1   :  { %1701 = vpow2.f32 %v1092_v24  ;;  %965 = vadd.xlane.f32.xlu0 %v964_v49 }
 0x7d2   :  { %1703 = vpow2.f32 %v1090_v23 }
 0x7d3   :  { %v1700_v25 = vpop.eup %1699 }
 0x7d4   :  { %v961_v26 = vsel %vm73_vm0, %v1700_v25, 0.0 }
 0x7d5   :  { %962 = vadd.xlane.f32.xlu1 %v961_v26 }
 0x7db   :  { %v1702_v27 = vpop.eup %1701 }
 0x7dc   :  { %v1097_v31 = vsel %vm73_vm0, %v1702_v27, 0.0  ;;  %v1704_v34 = vpop.eup %1703 }
 0x7dd   :  { %1098 = vadd.xlane.f32.xlu0 %v1097_v31  ;;  %v1094_v35 = vsel %vm73_vm0, %v1704_v34, 0.0 }
 0x7e1   :  { %1095 = vadd.xlane.f32.xlu0 %v1094_v35 }
 0x7f7   :  { %1677 = vrot.lane.b32.xlu0 %v1676_v48, %s1763_s1 }
 0x7fb   :  { %1110 = vrot.lane.b32.xlu0 %v1335_v28, %s1763_s1 }
 0x85e   :  { %v966_v29 = vpop.xlane.xlu0 %965 }
 0x85f   :  { %1705 = vrcp.f32 %v966_v29 }
 0x862   :  { %v963_v30 = vpop.xlane.xlu1 %962 }
 0x863   :  { %1707 = vrcp.f32 %v963_v30 }
 0x869   :  { %v1706_v36 = vpop.eup %1705 }
 0x86a   :  { %v1099_v32 = vpop.xlane.xlu0 %1098  ;;  %v970_v42 = vmul.f32 %v1706_v36, %v1698_v22 }
 0x86b   :  { %1709 = vrcp.f32 %v1099_v32 }
 0x86d   :  { %v1708_v37 = vpop.eup %1707 }
 0x86e   :  { %v1096_v38 = vpop.xlane.xlu0 %1095  ;;  %v969_v39 = vmul.f32 %v1708_v37, %v1700_v25 }
 0x86f   :  { %1711 = vrcp.f32 %v1096_v38 }
 0x870   :  { %1535 = vmatprep.mubr.msk.f32.mxu0 %vm73_vm0, %v969_v39 }
 0x871   :  { %1536 = vmatmul.mubr.msk.f32.vlgmr.msra.gmra.mrb[8].mxu0 %vm73_vm0, %v970_v42 }
 0x872   :  { %v1678_v43 = vpop.permute.xlu0 %1677 }
 0x873   :  { %v1680_v44 = vunpack.i.h.bf16 %v1678_v43  ;;  %v1679_v47 = vunpack.i.l.bf16 %v1678_v43 }
 0x875   :  { %v1648_v48 = vpack.c.bf16 %v1680_v44, %v1679_v47  ;;  %v1710_v52 = vpop.eup %1709 }
 0x876   :  { %v1103_v57 = vmul.f32 %v1710_v52, %v1702_v27  ;;  %v1111_v33 = vpop.permute.xlu0 %1110 }
 0x877   :  { %1649 = vmatprep.subr.bf16.mxu0 %v1648_v48 }
 0x878   :  { %1651 = vmatpush3.bf16.msra.mxu0 %v1648_v48 }
 0x879   :  { %v1712_v53 = vpop.eup %1711  ;;  %1652 = vmatprep.subr.bf16.mxu0 %v1765_v54 }
 0x87a   :  { %v1102_v55 = vmul.f32 %v1712_v53, %v1704_v34 }
 0x87c   :  { %1542 = vmatprep.mubr.msk.f32.mxu0 %vm73_vm0, %v1102_v55 }
 0x87d   :  { %1543 = vmatmul.mubr.msk.f32.vlgmr.msra.gmra.mrb[10].mxu0 %vm73_vm0, %v1103_v57 }
 0x87e   :  { %1654 = vmatpush3.bf16.msra.mxu0 %v1653_v56  ;;  %1549 = vmatprep.mubr.msk.f32.mxu0 %vm1766_vm14, %v1767_v58 }
 0x881   :  { %1550 = vmatmul.mubr.msk.f32.vlgmr.msra.gmra.mrb[12].mxu0 %vm73_vm0, %v1204_v59 }
 0x944   :  { %v1537_v60 = vpop.f32.mrb[8].mxu0 }
 0x945   :  { %v1055_v61 = vadd.f32 %v1537_v60, %v1335_v28  ;;  %v1049_v62 = vpop.f32.mrb[9].mxu0 }
 0x946   :  { %v1050_v63 = vadd.f32 %v1335_v28, %v1049_v62 }
 0x947   :  { %1059 = vst.msk [vmem:[#allocation5 + $0x8] sm:$0xff] %vm479_vm8, %v1055_v61 }
 0x948   :  { %1058 = vst.msk [vmem:[#allocation5] sm:$0xff] %vm479_vm8, %v1050_v63 }
 0x950   :  { %v1544_v0 = vpop.f32.mrb[10].mxu0 }
 0x951   :  { %v1191_v1 = vadd.f32 %v1544_v0, %v1111_v33  ;;  %v1185_v2 = vpop.f32.mrb[11].mxu0 }
 0x952   :  { %v1186_v3 = vadd.f32 %v1185_v2, %v1111_v33 }
 0x953   :  { %1198 = vrot.lane.b32.xlu0 %v1191_v1, %s1764_s5 }
 0x954   :  { %1196 = vrot.lane.b32.xlu1 %v1186_v3, %s1764_s5  ;;  %v1283_v5 = vpop.f32.mrb[12].mxu0 }
 0x955   :  { %v1284_v46 = vadd.f32 %v1340_v4, %v1283_v5  ;;  %v1551_v40 = vpop.f32.mrb[13].mxu0 }
 0x957   :  { %1287 = vst.msk [vmem:[#allocation3] sm:$0xff] %vm155_vm1, %v1284_v46 }
 0x958   :  { %1724 = shalt.err (!%p1721_p4)
}
 0x959   :  { %s1725_s17 = scalar_lea.hbm %s2166_s13, 128 }
 0x95a   :  { %p1726_p5 = scmp.ne.s32.totalorder %s2166_s13, %s1725_s17  ;;  %p1729_p6 = scmp.lt.u32.totalorder %s1725_s17, %s2166_s13 }
 0x95c   :  { %p1731_p7 = pnand %p1729_p6, %p1726_p5 }
 0x95e   :  { %1734 = shalt.err (!%p1731_p7)
}
 0x95f   :  { %1297 = dma.vmem_to_hbm [thread:$0]  %s1295_s30, 128, %s2166_s13, [#allocation4]  }
 0x960   :  { %s1769_s20 = smov [#allocation5]  }
 0x961   :  { %s1303_s21 = sshll.u32 %s1769_s20, 4  ;;  %s1304_s21 = int_to_ptr.vmem [resolvable:$true] %s1303_s21 }
 0x962   :  { %s1735_s6 = scalar_lea.vmem %s1304_s21, 256  ;;  %p1740_p9 = scmp.lt.s32.totalorder %s1304_s21, %s1304_s21 }
 0x963   :  { %p1736_p8 = scmp.ne.s32.totalorder %s1304_s21, %s1735_s6  ;;  %p1741_p10 = scmp.lt.s32.totalorder %s1735_s6, %s1735_s6 }
 0x965   :  { %p1742_p11 = por %p1741_p10, %p1740_p9 }
 0x967   :  { %p1743_p12 = pnand %p1742_p11, %p1736_p8 }
 0x9c5   :  { %v1199_v41 = vpop.permute.xlu0 %1198 }
 0x9c6   :  { %1203 = vst.msk [vmem:[#allocation5 + $0x8] sm:$0xff] %vm626_vm9, %v1199_v41  ;;  %v1197_v6 = vpop.permute.xlu1 %1196 }
 0x9c7   :  { %1202 = vst.msk [vmem:[#allocation5] sm:$0xff] %vm626_vm9, %v1197_v6 }
 0x9c8   :  { %1746 = shalt.err (!%p1743_p12)
}
 0x9c9   :  { %s1747_s13 = scalar_lea.hbm %s2167_s14, 256 }
 0x9ca   :  { %p1748_p13 = scmp.ne.s32.totalorder %s2167_s14, %s1747_s13  ;;  %p1751_p0 = scmp.lt.u32.totalorder %s1747_s13, %s2167_s14 }
 0x9cc   :  { %p1753_p1 = pnand %p1751_p0, %p1748_p13 }
 0x9ce   :  { %1756 = shalt.err (!%p1753_p1)
}
 0x9cf   :  { %s1770_s9 = smov 128   ;;  %s1771_s1 = smov 8  }
 0x9d0   :  { %1309 = dma.vmem_to_hbm [thread:$0]  %s1304_s21, 256, %s2167_s14, [#allocation6], %s1770_s9, %s1770_s9, %s1771_s1  }
 0x9d1   :  { %1757 = dma.done.wait [#allocation4], 128  }
 0x9d2   :  { %1758 = vsyncadd [#allocation4], 4294967168 }
 0x9d3   :  { %1759 = dma.done.wait [#allocation6], 256  }
 0x9d4   :  { %1760 = vsyncadd [#allocation6], 4294967040 }
 0x9d5   :  { %1316 = vsyncpa [#allocation4], 1 }
 0x9d6   :  { %1317 = vsyncpa [#allocation6], 1 }

</bundles_post_ra>
